<compile_context>
chip_gen: v6e
topology: v6e:2x2x1
jax: 0.10.0
libtpu: 0.0.40
codegen_flags: <defaults>
</compile_context>

<pallas_src>
import functools

import jax
import jax.numpy as jnp
from jax.experimental import pallas as pl
from jax.experimental.pallas import tpu as pltpu


def _iac_rnn_kernel(
    x_ref, h0_ref,                                   # streamed x, initial hidden
    w1_ref, wi_ref, wh_ref, w2_ref, wheads_ref,      # resident weights
    bias_ref,                                        # resident packed biases
    heads_ref, hout_ref,                             # streamed heads, carried hidden
):
    Hp = hout_ref.shape[-1]        # lane-padded hidden dim (multiple of 128)
    P = heads_ref.shape[-1]        # lane-padded heads dim  (multiple of 128)
    t = pl.program_id(1)

    # Hidden carry lives in the (constant-index, VMEM-resident) output block.
    @pl.when(t == 0)
    def _():
        hout_ref[...] = h0_ref[...]

    x = x_ref[...]                 # (B_blk, D)
    h = hout_ref[...]              # (B_blk, Hp)

    # Packed biases: every segment starts on a 128-lane boundary.
    bi = bias_ref[0:1, 0:3 * Hp]       # [b_ir | b_iz | b_in]
    bh = bias_ref[1:2, 0:3 * Hp]       # [b_hr | b_hz | b_hn]
    b1 = bias_ref[2:3, 0:Hp]
    b2 = bias_ref[2:3, Hp:2 * Hp]
    bhd = bias_ref[3:4, 0:P]           # [b_policy | b_value | 0-pad]

    # fc1 + ReLU
    xh = jnp.maximum(
        jnp.dot(x, w1_ref[...], preferred_element_type=jnp.float32) + b1, 0.0)

    # GRUCell (PyTorch semantics); 6 gate matmuls fused into 2, gate slices
    # at lane offsets 0 / Hp / 2*Hp (all 128-aligned).
    gi = jnp.dot(xh, wi_ref[...], preferred_element_type=jnp.float32) + bi
    gh = jnp.dot(h, wh_ref[...], preferred_element_type=jnp.float32) + bh

    i_r, i_z, i_n = gi[:, 0:Hp], gi[:, Hp:2 * Hp], gi[:, 2 * Hp:3 * Hp]
    h_r, h_z, h_n = gh[:, 0:Hp], gh[:, Hp:2 * Hp], gh[:, 2 * Hp:3 * Hp]

    r = jax.nn.sigmoid(i_r + h_r)
    z = jax.nn.sigmoid(i_z + h_z)
    n = jnp.tanh(i_n + r * h_n)
    h_new = (1.0 - z) * n + z * h      # padding lanes stay exactly zero

    # fc2 (no activation in the reference forward), then fused heads matmul:
    # w_heads = [policy(A) | value(1) | zero-pad] -> lane-dense (B_blk, P) store.
    q = jnp.dot(h_new, w2_ref[...], preferred_element_type=jnp.float32) + b2
    heads_ref[...] = (
        jnp.dot(q, wheads_ref[...], preferred_element_type=jnp.float32) + bhd)
    hout_ref[...] = h_new


@functools.partial(jax.jit, static_argnames=("n_actions", "b_block"))
def iac_rnn_rollout(xs, hidden_state, packed, *, n_actions, b_block=None):
    """Fused IACRNNModel rollout.

    xs:           (T, B, input_shape) f32  (already-processed observations)
    hidden_state: (B, n_hidden)       f32
    packed:       dict from pack_params()
    returns (values (T,B,1), logits (T,B,n_actions), h_last (B,n_hidden))
    """
    T, B, D = xs.shape
    H = hidden_state.shape[-1]
    Hp = packed["w2"].shape[0]
    P = packed["w_heads"].shape[1]

    if b_block is None:
        b_block = B                          # one shard; use >=2 shards (mult of 8) on v7x
    nb = pl.cdiv(B, b_block)

    # Lane-pad the initial hidden state; padding lanes are provably kept at 0.
    h0 = jnp.zeros((B, Hp), jnp.float32).at[:, :H].set(hidden_state.reshape(-1, H))

    # Advisory cost estimate so XLA schedules this small custom call sensibly.
    flops = 2 * T * B * (D * Hp + 2 * Hp * 3 * Hp + Hp * Hp + Hp * P)
    transcendentals = 5 * T * B * Hp
    weight_bytes = sum(
        int(packed[k].size) * packed[k].dtype.itemsize
        for k in ("w1", "wi", "wh", "w2", "w_heads", "biases"))
    bytes_accessed = 4 * (xs.size + h0.size + T * B * P + B * Hp) + weight_bytes

    def const_spec(shape):
        return pl.BlockSpec(shape, lambda b, t, _shape=shape: (0,) * len(_shape))

    grid_spec = pltpu.PrefetchScalarGridSpec(
        num_scalar_prefetch=0,
        grid=(nb, T),
        in_specs=[
            pl.BlockSpec((None, b_block, D), lambda b, t: (t, b, 0)),   # xs (streamed)
            pl.BlockSpec((b_block, Hp), lambda b, t: (b, 0)),           # h0 (per shard)
            const_spec(packed["w1"].shape),                             # resident weights
            const_spec(packed["wi"].shape),
            const_spec(packed["wh"].shape),
            const_spec(packed["w2"].shape),
            const_spec(packed["w_heads"].shape),
            const_spec(packed["biases"].shape),
        ],
        out_specs=(
            pl.BlockSpec((None, b_block, P), lambda b, t: (t, b, 0)),   # heads (streamed)
            pl.BlockSpec((b_block, Hp), lambda b, t: (b, 0)),           # hidden carry/final
        ),
    )

    heads, h_last_p = pl.pallas_call(
        _iac_rnn_kernel,
        grid_spec=grid_spec,
        out_shape=(
            jax.ShapeDtypeStruct((T, B, P), jnp.float32),   # packed [logits|value|pad]
            jax.ShapeDtypeStruct((B, Hp), jnp.float32),     # final hidden (lane-padded)
        ),
        compiler_params=pltpu.CompilerParams(
            dimension_semantics=("parallel", "arbitrary")),
        cost_estimate=pl.CostEstimate(
            flops=int(flops),
            transcendentals=int(transcendentals),
            bytes_accessed=int(bytes_accessed)),
    )(xs, h0,
      packed["w1"], packed["wi"], packed["wh"], packed["w2"], packed["w_heads"],
      packed["biases"])

    logits = heads[:, :, :n_actions]
    values = heads[:, :, n_actions:n_actions + 1]
    h_last = h_last_p[:, :H]
    return values, logits, h_last


def iac_rnn_forward(x, hidden_state, packed, n_actions):
    """Single-step forward matching the PyTorch module: (value, logits, h)."""
    values, logits, h_last = iac_rnn_rollout(
        x[None], hidden_state, packed, n_actions=n_actions)
    return values[0], logits[0], h_last


def pack_params(p, n_actions):
    """Pack per-layer params into 6 lane-dense, lane-tile-padded kernel operands."""
    H = p["w2"].shape[0]
    D = p["w1"].shape[0]
    A = n_actions
    Hp = 128 * pl.cdiv(H, 128)          # hidden dim padded to a lane tile
    P = 128 * pl.cdiv(A + 1, 128)       # heads out-dim padded to a lane tile
    W = max(3 * Hp, P)                  # bias-slab lane width

    def pad2(w, rows, cols):
        return jnp.zeros((rows, cols), jnp.float32).at[:w.shape[0], :w.shape[1]].set(w)

    w1 = pad2(p["w1"], D, Hp)
    wi = jnp.concatenate(
        [pad2(p["wir"], Hp, Hp), pad2(p["wiz"], Hp, Hp), pad2(p["win"], Hp, Hp)], axis=1)
    wh = jnp.concatenate(
        [pad2(p["whr"], Hp, Hp), pad2(p["whz"], Hp, Hp), pad2(p["whn"], Hp, Hp)], axis=1)
    w2 = pad2(p["w2"], Hp, Hp)
    w_heads = (jnp.zeros((Hp, P), jnp.float32)
               .at[:H, :A].set(p["wp"])
               .at[:H, A:A + 1].set(p["wv"]))

    bi = jnp.concatenate(
        [pad2(p["bir"], 1, Hp), pad2(p["biz"], 1, Hp), pad2(p["bin"], 1, Hp)], axis=1)
    bh = jnp.concatenate(
        [pad2(p["bhr"], 1, Hp), pad2(p["bhz"], 1, Hp), pad2(p["bhn"], 1, Hp)], axis=1)
    b_lin = jnp.concatenate([pad2(p["b1"], 1, Hp), pad2(p["b2"], 1, Hp)], axis=1)
    b_heads = (jnp.zeros((1, P), jnp.float32)
               .at[:, :A].set(p["bp"]).at[:, A:A + 1].set(p["bv"]))

    biases = jnp.zeros((4, W), jnp.float32)
    biases = biases.at[0, :3 * Hp].set(bi[0])
    biases = biases.at[1, :3 * Hp].set(bh[0])
    biases = biases.at[2, :2 * Hp].set(b_lin[0])
    biases = biases.at[3, :P].set(b_heads[0])

    return {"w1": w1, "wi": wi, "wh": wh, "w2": w2, "w_heads": w_heads, "biases": biases}


def init_params(key, input_shape, n_hidden, n_actions):
    """Deterministic parameter init mirroring the PyTorch module's shapes.

    All weights stored as (in, out); biases as (1, out).
    """
    ks = jax.random.split(key, 20)

    def lin(kw, kb, fan_in, fan_out):
        bound = 1.0 / jnp.sqrt(fan_in)
        w = jax.random.uniform(kw, (fan_in, fan_out), jnp.float32, -bound, bound)
        b = jax.random.uniform(kb, (1, fan_out), jnp.float32, -bound, bound)
        return w, b

    p = {}
    p["w1"], p["b1"] = lin(ks[0], ks[1], input_shape, n_hidden)
    p["wir"], p["bir"] = lin(ks[2], ks[3], n_hidden, n_hidden)
    p["wiz"], p["biz"] = lin(ks[4], ks[5], n_hidden, n_hidden)
    p["win"], p["bin"] = lin(ks[6], ks[7], n_hidden, n_hidden)
    p["whr"], p["bhr"] = lin(ks[8], ks[9], n_hidden, n_hidden)
    p["whz"], p["bhz"] = lin(ks[10], ks[11], n_hidden, n_hidden)
    p["whn"], p["bhn"] = lin(ks[12], ks[13], n_hidden, n_hidden)
    p["w2"], p["b2"] = lin(ks[14], ks[15], n_hidden, n_hidden)
    p["wp"], p["bp"] = lin(ks[16], ks[17], n_hidden, n_actions)
    p["wv"], p["bv"] = lin(ks[18], ks[19], n_hidden, 1)
    return p


def reference_rollout(xs, h0, p):
    """Pure-JAX reference (scan of the PyTorch-semantics forward)."""
    def step(h, x):
        xh = jnp.maximum(x @ p["w1"] + p["b1"], 0.0)
        r = jax.nn.sigmoid(xh @ p["wir"] + p["bir"] + h @ p["whr"] + p["bhr"])
        z = jax.nn.sigmoid(xh @ p["wiz"] + p["biz"] + h @ p["whz"] + p["bhz"])
        n = jnp.tanh(xh @ p["win"] + p["bin"] + r * (h @ p["whn"] + p["bhn"]))
        h_new = (1.0 - z) * n + z * h
        q = h_new @ p["w2"] + p["b2"]
        logits = q @ p["wp"] + p["bp"]
        value = q @ p["wv"] + p["bv"]
        return h_new, (value, logits, h_new)

    h_last, (values, logits, hs) = jax.lax.scan(step, h0, xs)
    return values, logits, hs, h_last


if __name__ == "__main__":
    # Small shapes consistent with the module: process() produces (batch, input_shape),
    # hidden is (batch, n_hidden); a short T-step rollout exercises the in-kernel loop.
    # (For throughput the caller should batch >=128 environments per call; kept small here.)
    batch = 8
    input_shape = 16   # N = 4 + 3*|friends| + 4*|enemies| in the original; synthetic here
    n_hidden = 32      # args.n_hidden
    n_actions = 8
    T = 8

    key = jax.random.PRNGKey(0)
    k_x, k_h, k_p = jax.random.split(key, 3)

    xs = jax.random.normal(k_x, (T, batch, input_shape), jnp.float32)
    hidden_state = jax.random.normal(k_h, (batch, n_hidden), jnp.float32)
    params = init_params(k_p, input_shape, n_hidden, n_actions)
    packed = pack_params(params, n_actions)

    # Pure-JAX reference for correctness checks.
    v_ref, l_ref, hs_ref, h_last_ref = reference_rollout(xs, hidden_state, params)

    # Full rollout in one pallas_call (grid=(1, T), weights resident, hidden carried).
    values, logits, h_last = iac_rnn_rollout(xs, hidden_state, packed, n_actions=n_actions)
    jax.block_until_ready((values, logits, h_last))

    assert values.shape == (T, batch, 1)
    assert logits.shape == (T, batch, n_actions)
    assert h_last.shape == (batch, n_hidden)
    assert jnp.allclose(values, v_ref, atol=1e-4), "rollout value mismatch"
    assert jnp.allclose(logits, l_ref, atol=1e-4), "rollout logits mismatch"
    assert jnp.allclose(h_last, h_last_ref, atol=1e-4), "rollout hidden mismatch"

    # Single-step forward matching the module's forward(inputs, hidden_state).
    v1, l1, h1 = iac_rnn_forward(xs[0], hidden_state, packed, n_actions=n_actions)
    jax.block_until_ready((v1, l1, h1))

    assert jnp.allclose(v1, v_ref[0], atol=1e-4), "step value mismatch"
    assert jnp.allclose(l1, l_ref[0], atol=1e-4), "step logits mismatch"
    assert jnp.allclose(h1, hs_ref[0], atol=1e-4), "step hidden mismatch"

    print("KERNEL_OK")
</pallas_src>

<mosaic_0001>
module attributes {stable_mosaic.version = 11 : i64} {
  func.func @_iac_rnn_kernel(%arg0: i32, %arg1: i32, %arg2: memref<1x8x16xf32, #tpu.memory_space<vmem>>, %arg3: memref<8x128xf32, #tpu.memory_space<vmem>>, %arg4: memref<16x128xf32, #tpu.memory_space<vmem>>, %arg5: memref<128x384xf32, #tpu.memory_space<vmem>>, %arg6: memref<128x384xf32, #tpu.memory_space<vmem>>, %arg7: memref<128x128xf32, #tpu.memory_space<vmem>>, %arg8: memref<128x128xf32, #tpu.memory_space<vmem>>, %arg9: memref<4x384xf32, #tpu.memory_space<vmem>>, %arg10: memref<1x8x128xf32, #tpu.memory_space<vmem>>, %arg11: memref<8x128xf32, #tpu.memory_space<vmem>>) attributes {dimension_semantics = [#tpu.dimension_semantics<parallel>, #tpu.dimension_semantics<arbitrary>], iteration_bounds = array<i64: 1, 8>, scalar_prefetch = 0 : i64, scratch_operands = 0 : i64, tpu.core_type = #tpu.core_type<tc>, window_params = [{transform_indices = @transform_0, window_bounds = array<i64: 1, 8, 16>}, {transform_indices = @transform_1, window_bounds = array<i64: 8, 128>}, {pipeline_mode = #tpu.pipeline_mode<synchronous>, transform_indices = @transform_2, window_bounds = array<i64: 16, 128>}, {pipeline_mode = #tpu.pipeline_mode<synchronous>, transform_indices = @transform_3, window_bounds = array<i64: 128, 384>}, {pipeline_mode = #tpu.pipeline_mode<synchronous>, transform_indices = @transform_4, window_bounds = array<i64: 128, 384>}, {pipeline_mode = #tpu.pipeline_mode<synchronous>, transform_indices = @transform_5, window_bounds = array<i64: 128, 128>}, {pipeline_mode = #tpu.pipeline_mode<synchronous>, transform_indices = @transform_6, window_bounds = array<i64: 128, 128>}, {pipeline_mode = #tpu.pipeline_mode<synchronous>, transform_indices = @transform_7, window_bounds = array<i64: 4, 384>}, {transform_indices = @transform_8, window_bounds = array<i64: 1, 8, 128>}, {transform_indices = @transform_9, window_bounds = array<i64: 8, 128>}]} {
    %c0_i32 = arith.constant 0 : i32
    %0 = arith.cmpi eq, %arg1, %c0_i32 : i32
    %1 = arith.extui %0 : i1 to i32
    %c0_i32_0 = arith.constant 0 : i32
    %2 = arith.cmpi ne, %1, %c0_i32_0 : i32
    scf.if %2 {
      %c0_34 = arith.constant 0 : index
      %c0_35 = arith.constant 0 : index
      %63 = vector.load %arg3[%c0_34, %c0_35] : memref<8x128xf32, #tpu.memory_space<vmem>>, vector<8x128xf32>
      %c0_36 = arith.constant 0 : index
      %c0_37 = arith.constant 0 : index
      %64 = vector.load %arg11[%c0_36, %c0_37] : memref<8x128xf32, #tpu.memory_space<vmem>>, vector<8x128xf32>
      tpu.vector_store %arg11[%c0_36, %c0_37], %63 {strides = array<i32>} : memref<8x128xf32, #tpu.memory_space<vmem>>, vector<8x128xf32>,
    } else {
    }
    %c0 = arith.constant 0 : index
    %c0_1 = arith.constant 0 : index
    %c0_2 = arith.constant 0 : index
    %3 = vector.load %arg2[%c0, %c0_1, %c0_2] : memref<1x8x16xf32, #tpu.memory_space<vmem>>, vector<1x8x16xf32>
    %4 = vector.shape_cast %3 : vector<1x8x16xf32> to vector<8x16xf32>
    %c0_3 = arith.constant 0 : index
    %c0_4 = arith.constant 0 : index
    %5 = vector.load %arg11[%c0_3, %c0_4] : memref<8x128xf32, #tpu.memory_space<vmem>>, vector<8x128xf32>
    %c0_5 = arith.constant 0 : index
    %c0_6 = arith.constant 0 : index
    %6 = vector.load %arg9[%c0_5, %c0_6] : memref<4x384xf32, #tpu.memory_space<vmem>>, vector<1x384xf32>
    %c1 = arith.constant 1 : index
    %c0_7 = arith.constant 0 : index
    %7 = vector.load %arg9[%c1, %c0_7] : memref<4x384xf32, #tpu.memory_space<vmem>>, vector<1x384xf32>
    %c2 = arith.constant 2 : index
    %c0_8 = arith.constant 0 : index
    %8 = vector.load %arg9[%c2, %c0_8] : memref<4x384xf32, #tpu.memory_space<vmem>>, vector<1x128xf32>
    %c2_9 = arith.constant 2 : index
    %c128 = arith.constant 128 : index
    %9 = vector.load %arg9[%c2_9, %c128] : memref<4x384xf32, #tpu.memory_space<vmem>>, vector<1x128xf32>
    %c3 = arith.constant 3 : index
    %c0_10 = arith.constant 0 : index
    %10 = vector.load %arg9[%c3, %c0_10] : memref<4x384xf32, #tpu.memory_space<vmem>>, vector<1x128xf32>
    %c0_11 = arith.constant 0 : index
    %c0_12 = arith.constant 0 : index
    %11 = vector.load %arg4[%c0_11, %c0_12] : memref<16x128xf32, #tpu.memory_space<vmem>>, vector<16x128xf32>
    %cst = arith.constant dense<0.000000e+00> : vector<8x128xf32>
    %12 = tpu.matmul %4, %11, %cst {dimension_numbers = #tpu.dot_dimension_numbers<[1], [0], [0], [1], [0, 0, 1, 1], [], []>} : vector<8x16xf32>, vector<16x128xf32>, vector<8x128xf32> -> vector<8x128xf32>
    %13 = vector.broadcast %8 : vector<1x128xf32> to vector<8x128xf32>
    %14 = arith.addf %12, %13 : vector<8x128xf32>
    %cst_13 = arith.constant 0.000000e+00 : f32
    %15 = vector.broadcast %cst_13 : f32 to vector<8x128xf32>
    %16 = arith.maximumf %14, %15 : vector<8x128xf32>
    %c0_14 = arith.constant 0 : index
    %c0_15 = arith.constant 0 : index
    %17 = vector.load %arg5[%c0_14, %c0_15] : memref<128x384xf32, #tpu.memory_space<vmem>>, vector<128x384xf32>
    %cst_16 = arith.constant dense<0.000000e+00> : vector<8x384xf32>
    %18 = tpu.matmul %16, %17, %cst_16 {dimension_numbers = #tpu.dot_dimension_numbers<[1], [0], [0], [1], [0, 0, 1, 1], [], []>} : vector<8x128xf32>, vector<128x384xf32>, vector<8x384xf32> -> vector<8x384xf32>
    %19 = vector.broadcast %6 : vector<1x384xf32> to vector<8x384xf32>
    %20 = arith.addf %18, %19 : vector<8x384xf32>
    %c0_17 = arith.constant 0 : index
    %c0_18 = arith.constant 0 : index
    %21 = vector.load %arg6[%c0_17, %c0_18] : memref<128x384xf32, #tpu.memory_space<vmem>>, vector<128x384xf32>
    %cst_19 = arith.constant dense<0.000000e+00> : vector<8x384xf32>
    %22 = tpu.matmul %5, %21, %cst_19 {dimension_numbers = #tpu.dot_dimension_numbers<[1], [0], [0], [1], [0, 0, 1, 1], [], []>} : vector<8x128xf32>, vector<128x384xf32>, vector<8x384xf32> -> vector<8x384xf32>
    %23 = vector.broadcast %7 : vector<1x384xf32> to vector<8x384xf32>
    %24 = arith.addf %22, %23 : vector<8x384xf32>
    %25 = vector.extract_strided_slice %20 {offsets = [0, 0], sizes = [8, 128], strides = [1, 1]} : vector<8x384xf32> to vector<8x128xf32>
    %26 = vector.extract_strided_slice %20 {offsets = [0, 128], sizes = [8, 128], strides = [1, 1]} : vector<8x384xf32> to vector<8x128xf32>
    %27 = vector.extract_strided_slice %20 {offsets = [0, 256], sizes = [8, 128], strides = [1, 1]} : vector<8x384xf32> to vector<8x128xf32>
    %28 = vector.extract_strided_slice %24 {offsets = [0, 0], sizes = [8, 128], strides = [1, 1]} : vector<8x384xf32> to vector<8x128xf32>
    %29 = vector.extract_strided_slice %24 {offsets = [0, 128], sizes = [8, 128], strides = [1, 1]} : vector<8x384xf32> to vector<8x128xf32>
    %30 = vector.extract_strided_slice %24 {offsets = [0, 256], sizes = [8, 128], strides = [1, 1]} : vector<8x384xf32> to vector<8x128xf32>
    %31 = arith.addf %25, %28 : vector<8x128xf32>
    %32 = arith.negf %31 : vector<8x128xf32>
    %33 = math.exp %32 : vector<8x128xf32>
    %cst_20 = arith.constant 1.000000e+00 : f32
    %34 = vector.broadcast %cst_20 : f32 to vector<8x128xf32>
    %35 = arith.addf %34, %33 : vector<8x128xf32>
    %36 = arith.divf %34, %35 : vector<8x128xf32>
    %37 = arith.addf %26, %29 : vector<8x128xf32>
    %38 = arith.negf %37 : vector<8x128xf32>
    %39 = math.exp %38 : vector<8x128xf32>
    %cst_21 = arith.constant 1.000000e+00 : f32
    %40 = vector.broadcast %cst_21 : f32 to vector<8x128xf32>
    %41 = arith.addf %40, %39 : vector<8x128xf32>
    %42 = arith.divf %40, %41 : vector<8x128xf32>
    %43 = arith.mulf %36, %30 : vector<8x128xf32>
    %44 = arith.addf %27, %43 : vector<8x128xf32>
    %45 = math.tanh %44 : vector<8x128xf32>
    %cst_22 = arith.constant 1.000000e+00 : f32
    %46 = vector.broadcast %cst_22 : f32 to vector<8x128xf32>
    %47 = arith.subf %46, %42 : vector<8x128xf32>
    %48 = arith.mulf %47, %45 : vector<8x128xf32>
    %49 = arith.mulf %42, %5 : vector<8x128xf32>
    %50 = arith.addf %48, %49 : vector<8x128xf32>
    %c0_23 = arith.constant 0 : index
    %c0_24 = arith.constant 0 : index
    %51 = vector.load %arg7[%c0_23, %c0_24] : memref<128x128xf32, #tpu.memory_space<vmem>>, vector<128x128xf32>
    %cst_25 = arith.constant dense<0.000000e+00> : vector<8x128xf32>
    %52 = tpu.matmul %50, %51, %cst_25 {dimension_numbers = #tpu.dot_dimension_numbers<[1], [0], [0], [1], [0, 0, 1, 1], [], []>} : vector<8x128xf32>, vector<128x128xf32>, vector<8x128xf32> -> vector<8x128xf32>
    %53 = vector.broadcast %9 : vector<1x128xf32> to vector<8x128xf32>
    %54 = arith.addf %52, %53 : vector<8x128xf32>
    %c0_26 = arith.constant 0 : index
    %c0_27 = arith.constant 0 : index
    %55 = vector.load %arg8[%c0_26, %c0_27] : memref<128x128xf32, #tpu.memory_space<vmem>>, vector<128x128xf32>
    %cst_28 = arith.constant dense<0.000000e+00> : vector<8x128xf32>
    %56 = tpu.matmul %54, %55, %cst_28 {dimension_numbers = #tpu.dot_dimension_numbers<[1], [0], [0], [1], [0, 0, 1, 1], [], []>} : vector<8x128xf32>, vector<128x128xf32>, vector<8x128xf32> -> vector<8x128xf32>
    %57 = vector.broadcast %10 : vector<1x128xf32> to vector<8x128xf32>
    %58 = arith.addf %56, %57 : vector<8x128xf32>
    %c0_29 = arith.constant 0 : index
    %c0_30 = arith.constant 0 : index
    %c0_31 = arith.constant 0 : index
    %59 = vector.load %arg10[%c0_29, %c0_30, %c0_31] : memref<1x8x128xf32, #tpu.memory_space<vmem>>, vector<1x8x128xf32>
    %60 = vector.shape_cast %59 : vector<1x8x128xf32> to vector<8x128xf32>
    %61 = vector.shape_cast %58 : vector<8x128xf32> to vector<1x8x128xf32>
    tpu.vector_store %arg10[%c0_29, %c0_30, %c0_31], %61 {strides = array<i32>} : memref<1x8x128xf32, #tpu.memory_space<vmem>>, vector<1x8x128xf32>,
    %c0_32 = arith.constant 0 : index
    %c0_33 = arith.constant 0 : index
    %62 = vector.load %arg11[%c0_32, %c0_33] : memref<8x128xf32, #tpu.memory_space<vmem>>, vector<8x128xf32>
    tpu.vector_store %arg11[%c0_32, %c0_33], %50 {strides = array<i32>} : memref<8x128xf32, #tpu.memory_space<vmem>>, vector<8x128xf32>,
    return
  }
  func.func @transform_0(%arg0: i32, %arg1: i32) -> (i32, i32, i32) {
    %c0_i32 = arith.constant 0 : i32
    %c0_i32_0 = arith.constant 0 : i32
    return %arg1, %arg0, %c0_i32 : i32, i32, i32
  }
  func.func @transform_1(%arg0: i32, %arg1: i32) -> (i32, i32) {
    %c0_i32 = arith.constant 0 : i32
    %c0_i32_0 = arith.constant 0 : i32
    return %arg0, %c0_i32 : i32, i32
  }
  func.func @transform_2(%arg0: i32, %arg1: i32) -> (i32, i32) {
    %c0_i32 = arith.constant 0 : i32
    %c0_i32_0 = arith.constant 0 : i32
    %c0_i32_1 = arith.constant 0 : i32
    return %c0_i32, %c0_i32_0 : i32, i32
  }
  func.func @transform_3(%arg0: i32, %arg1: i32) -> (i32, i32) {
    %c0_i32 = arith.constant 0 : i32
    %c0_i32_0 = arith.constant 0 : i32
    %c0_i32_1 = arith.constant 0 : i32
    return %c0_i32, %c0_i32_0 : i32, i32
  }
  func.func @transform_4(%arg0: i32, %arg1: i32) -> (i32, i32) {
    %c0_i32 = arith.constant 0 : i32
    %c0_i32_0 = arith.constant 0 : i32
    %c0_i32_1 = arith.constant 0 : i32
    return %c0_i32, %c0_i32_0 : i32, i32
  }
  func.func @transform_5(%arg0: i32, %arg1: i32) -> (i32, i32) {
    %c0_i32 = arith.constant 0 : i32
    %c0_i32_0 = arith.constant 0 : i32
    %c0_i32_1 = arith.constant 0 : i32
    return %c0_i32, %c0_i32_0 : i32, i32
  }
  func.func @transform_6(%arg0: i32, %arg1: i32) -> (i32, i32) {
    %c0_i32 = arith.constant 0 : i32
    %c0_i32_0 = arith.constant 0 : i32
    %c0_i32_1 = arith.constant 0 : i32
    return %c0_i32, %c0_i32_0 : i32, i32
  }
  func.func @transform_7(%arg0: i32, %arg1: i32) -> (i32, i32) {
    %c0_i32 = arith.constant 0 : i32
    %c0_i32_0 = arith.constant 0 : i32
    %c0_i32_1 = arith.constant 0 : i32
    return %c0_i32, %c0_i32_0 : i32, i32
  }
  func.func @transform_8(%arg0: i32, %arg1: i32) -> (i32, i32, i32) {
    %c0_i32 = arith.constant 0 : i32
    %c0_i32_0 = arith.constant 0 : i32
    return %arg1, %arg0, %c0_i32 : i32, i32, i32
  }
  func.func @transform_9(%arg0: i32, %arg1: i32) -> (i32, i32) {
    %c0_i32 = arith.constant 0 : i32
    %c0_i32_0 = arith.constant 0 : i32
    return %arg0, %c0_i32 : i32, i32
  }
}

</mosaic_0001>

<bundles_post_ra>
// kernel: iac_rnn_rollout.1
= control target key start
LH: loop header
LB: loop body
LE: loop exit
PB: predicated region body
PF: predicated region fallthrough
CT: control target
= control target key end

     0   :  { %s2275_s0 = inlined_call_operand.hbm [shape: f32[8,8,16], index: 0, kind: input, shape index: {}]   ;;  %s2276_s1 = inlined_call_operand.vmem [shape: f32[8,128], index: 1, kind: input, shape index: {}]   ;;  %s2277_s2 = inlined_call_operand.vmem [shape: f32[16,128], index: 2, kind: input, shape index: {}]   ;;  %s2278_s3 = inlined_call_operand.hbm [shape: f32[128,384], index: 3, kind: input, shape index: {}]   ;;  %s2279_s4 = inlined_call_operand.hbm [shape: f32[128,384], index: 4, kind: input, shape index: {}]   ;;  %s2280_s5 = inlined_call_operand.hbm [shape: f32[128,128], index: 5, kind: input, shape index: {}]   ;;  %s2281_s6 = inlined_call_operand.hbm [shape: f32[128,128], index: 6, kind: input, shape index: {}]   ;;  %s2282_s7 = inlined_call_operand.vmem [shape: f32[4,384], index: 7, kind: input, shape index: {}]   ;;  %s2283_s8 = inlined_call_operand.vmem [shape: f32[8,8,128], index: 8, kind: output, shape index: {0}]   ;;  %s2284_s9 = inlined_call_operand.hbm [shape: f32[8,128], index: 9, kind: output, shape index: {1}]  }
   0x1   :  { %2286 = sst [smem:[#allocation16_spill]] %s2278_s3 }
   0x2   :  { %2287 = sst [smem:[#allocation17_spill]] %s2279_s4 }
   0x3   :  { %2288 = sst [smem:[#allocation18_spill]] %s2280_s5 }
   0x4   :  { %15 = vsyncpa [#allocation3], 0 }
   0x5   :  { %17 = vsyncpa [#allocation3 + $0x1], 0 }
   0x6   :  { %18 = vsyncpa [#allocation6], 0 }
   0x7   :  { %19 = vsyncpa [#allocation9], 0 }
   0x8   :  { %20 = vsyncpa [#allocation4], 0  ;;  %s1972_s30 = smov 0   ;;  %s1974_s10 = smov 0  }
   0x9   :  { %s1976_s11 = smov 0   ;;  %s1978_s12 = smov 0  }
   0xa   :  { %s1980_s13 = smov 0   ;;  %s1982_s14 = smov 0  }
   0xb LB: > { %s2285_s15 = sadd.s32 4294967295, %s1908_s14   ;;  %p1325_p0 = scmp.ge.s32.totalorder %s1908_s14, 1  ;;  %s1908_s14 = sphi %s1982_s14, %s26_s14   ;;  %s1904_s13 = sphi %s1980_s13, %s2304_s13   ;;  %s1900_s12 = sphi %s1978_s12, %s2303_s12   ;;  %s1896_s11 = sphi %s1976_s11, %s2302_s11   ;;  %s1892_s10 = sphi %s1974_s10, %s2301_s10   ;;  %s1888_s30 = sphi %s1972_s30, %s2300_s30  }
   0xc   : > { %p2006_p1 = scmp.eq.s32.totalorder %s2285_s15, 0  ;;  %p277_p2 = scmp.lt.s32.totalorder %s1908_s14, 9 }
   0xd   : > { %s1910_s18 = smov [#allocation5]   ;;  %s1911_s21 = smov [#allocation8]  }
   0xe   : > { %p2011_p3 = pnand %p1325_p0, %p277_p2  ;;  %s299_s19 = sshll.u32 %s1910_s18, 4  ;;  %s300_s19 = int_to_ptr.vmem [resolvable:$true] %s299_s19 }
   0xf   : > { %s325_s22 = sshll.u32 %s1911_s21, 4  ;;  %s1701_s23 = scalar_lea.vmem %s300_s19, 6144  ;;  %s326_s22 = int_to_ptr.vmem [resolvable:$true] %s325_s22 }
  0x10   : > { %p1593_p4 = pneg %p2011_p3  ;;  %p1702_p7 = scmp.ne.s32.totalorder %s300_s19, %s1701_s23 }
  0x11   : > { %p1709_p10 = scmp.lt.s32.totalorder %s300_s19, %s300_s19  ;;  %p1710_p11 = scmp.lt.s32.totalorder %s1701_s23, %s1701_s23 }
  0x12   : > { %p2019_p5 = pnand %p1593_p4, %p2006_p1 }
  0x13   : > { %p1711_p12 = por %p1710_p11, %p1709_p10 }
  0x14   : > { %p1692_p6 = pneg %p2019_p5 }
  0x16   : > { %p1704_p8 = pnand %p1702_p7, %p1692_p6 }
  0x18   : > { %p1705_p9 = pneg %p1704_p8 }
  0x1a   : > { %p1712_p13 = pnand %p1711_p12, %p1705_p9 }
  0x1c   : > { %1715 = shalt.err (!%p1712_p13)
}
  0x1d   : > { %s1912_s24 = smov 384   ;;  %s1913_s25 = smov 24  }
  0x1e   : > { %s2292_s3 = sld [smem:[#allocation16_spill]]  ;;  %s1727_s28 = scalar_lea.vmem %s326_s22, 2048 }
  0x1f   : > { %p1728_p0 = scmp.ne.s32.totalorder %s326_s22, %s1727_s28  ;;  %p1735_p7 = scmp.lt.s32.totalorder %s326_s22, %s326_s22 }
  0x20   : > { %p1736_p8 = scmp.lt.s32.totalorder %s1727_s28, %s1727_s28 }
  0x21   : > { %p1730_p2 = pnand %p1728_p0, %p1692_p6 }
  0x22   : > { %p1737_p9 = por %p1736_p8, %p1735_p7 }
  0x23   : > { %p1731_p4 = pneg %p1730_p2 }
  0x24   : > { %1596 = dma.hbm_to_vmem [thread:$0]  (!%p2019_p5), %s2292_s3, 6144, %s300_s19, [#allocation6], %s1912_s24, %s1912_s24, %s1913_s25  }
  0x25   : > { %p1738_p10 = pnand %p1737_p9, %p1731_p4 }
  0x27   : > { %1741 = shalt.err (!%p1738_p10)
}
  0x28   : > { %s1914_s29 = smov 128   ;;  %s1915_s18 = smov 8  }
  0x29   : > { %s2293_s5 = sld [smem:[#allocation18_spill]]  ;;  %s1916_s23 = smov [#allocation7]  }
  0x2a   : > { %s312_s26 = sshll.u32 %s1916_s23, 4  ;;  %s1917_s27 = smov [#allocation10]   ;;  %s313_s26 = int_to_ptr.vmem [resolvable:$true] %s312_s26 }
  0x2b   : > { %s338_s15 = sshll.u32 %s1917_s27, 4  ;;  %s1753_s28 = scalar_lea.vmem %s313_s26, 6144  ;;  %s339_s15 = int_to_ptr.vmem [resolvable:$true] %s338_s15 }
  0x2c   : > { %p1754_p11 = scmp.ne.s32.totalorder %s313_s26, %s1753_s28  ;;  %p1761_p0 = scmp.lt.s32.totalorder %s313_s26, %s313_s26 }
  0x2d   : > { %p1762_p2 = scmp.lt.s32.totalorder %s1753_s28, %s1753_s28 }
  0x2e   : > { %p1756_p12 = pnand %p1754_p11, %p1692_p6 }
  0x2f   : > { %1602 = dma.hbm_to_vmem [thread:$0]  (!%p2019_p5), %s2293_s5, 2048, %s326_s22, [#allocation9], %s1914_s29, %s1914_s29, %s1915_s18  }
  0x30   : > { %p1757_p13 = pneg %p1756_p12  ;;  %p1763_p4 = por %p1762_p2, %p1761_p0 }
  0x32   : > { %p1764_p7 = pnand %p1763_p4, %p1757_p13 }
  0x34   : > { %1767 = shalt.err (!%p1764_p7)
}
  0x35   : > { %s2294_s4 = sld [smem:[#allocation17_spill]]  ;;  %s1779_s21 = scalar_lea.vmem %s339_s15, 2048 }
  0x36   : > { %p1780_p8 = scmp.ne.s32.totalorder %s339_s15, %s1779_s21  ;;  %p1787_p11 = scmp.lt.s32.totalorder %s339_s15, %s339_s15 }
  0x37   : > { %p1788_p12 = scmp.lt.s32.totalorder %s1779_s21, %s1779_s21 }
  0x38   : > { %p1782_p9 = pnand %p1780_p8, %p1692_p6 }
  0x39   : > { %p1789_p13 = por %p1788_p12, %p1787_p11 }
  0x3a   : > { %p1783_p10 = pneg %p1782_p9 }
  0x3b   : > { %1599 = dma.hbm_to_vmem [thread:$0]  (!%p2019_p5), %s2294_s4, 6144, %s313_s26, [#allocation6], %s1912_s24, %s1912_s24, %s1913_s25  }
  0x3c   : > { %p1790_p0 = pnand %p1789_p13, %p1783_p10 }
  0x3e   : > { %1793 = shalt.err (!%p1790_p0)
}
  0x3f   : > { %1605 = dma.hbm_to_vmem [thread:$0]  (!%p2019_p5), %s2281_s6, 2048, %s339_s15, [#allocation9], %s1914_s29, %s1914_s29, %s1915_s18  }
  0x40   : > { %s35_s20 = sadd.s32 1, %s1904_s13  ;;  %s47_s24 = sadd.s32 1, %s1896_s11 }
  0x41   : > { %p36_p6 = scmp.ge.s32.totalorder %s35_s20, 8  ;;  %p54_p2 = scmp.ne.s32.totalorder %s1896_s11, %s1892_s10 }
  0x42   : > { %p55_p4 = scmp.eq.s32.totalorder %s1908_s14, 0  ;;  %p60_p7 = scmp.ne.s32.totalorder %s1892_s10, %s1888_s30 }
  0x43   : > { %s2306_s20 = smov (%p36_p6, %s35_s20), 0  ;;  %p1614_p5 = scmp.lt.s32.totalorder %s1908_s14, 8 }
  0x44   : > { %p2078_p8 = por %p55_p4, %p54_p2  ;;  %p2084_p9 = por %p2006_p1, %p60_p7 }
  0x45   : > { %s42_s15 = ssub.s32 %s1904_s13, %s2306_s20  ;;  %s355_s29 = sand.u32 1, %s1896_s11  }
  0x46   : > { %p45_p10 = scmp.eq.s32.totalorder %s42_s15, 0  ;;  %s1332_s18 = sshll.u32 %s355_s29, 3 }
  0x47   : > { %s1333_s30 = sshll.u32 %s1904_s13, 7  ;;  %s359_s23 = scalar_lea.vmem [#allocation2], %s1332_s18 }
  0x48   : > { %s2093_s28 = scalar_select %p45_p10, %s1896_s11, %s47_s24  }
  0x49   : > { %s365_s21 = scalar_lea.hbm %s2275_s0, %s1333_s30  ;;  %s367_s27 = sshll.u32 %s359_s23, 4  ;;  %s368_s27 = int_to_ptr.vmem [resolvable:$true] %s367_s27 }
  0x4a   : > { %p2101_p11 = pnand %p1614_p5, %p2078_p8  ;;  %s356_s4 = scalar_lea.sflag [#allocation3], %s355_s29 }
  0x4b   : > { %s1807_s15 = scalar_lea.vmem %s368_s27, 128  ;;  %s1918_s24 = smov [#allocation2]  }
  0x4c   : > { %p1796_p12 = pneg %p2101_p11  ;;  %p1808_p13 = scmp.ne.s32.totalorder %s368_s27, %s1807_s15 }
  0x4d   : > { %s1812_s5 = sshll.u32 %s1918_s24, 4  ;;  %s1813_s5 = int_to_ptr.vmem [resolvable:$false] %s1812_s5 }
  0x4e   : > { %p1810_p0 = pnand %p1808_p13, %p1796_p12  ;;  %s1814_s30 = scalar_lea.vmem %s1813_s5, 256 }
  0x4f   : > { %p1815_p2 = scmp.lt.s32.totalorder %s368_s27, %s1813_s5  ;;  %p1816_p4 = scmp.lt.s32.totalorder %s1814_s30, %s1807_s15 }
  0x50   : > { %p1811_p6 = pneg %p1810_p0 }
  0x51   : > { %p1817_p7 = por %p1816_p4, %p1815_p2 }
  0x53   : > { %p1818_p10 = pnand %p1817_p7, %p1811_p6 }
  0x55   : > { %1821 = shalt.err (!%p1818_p10)
}
  0x56   : > { %1609 = dma.hbm_to_vmem [thread:$0]  (!%p2101_p11), %s365_s21, 128, %s368_s27, %s356_s4  }
  0x57   : > { %376 = sbr.rel (%p2011_p3) target bundleno = 985 (0x3d9), region = 52  ;;  %s378_s25 = sand.u32 (!%p2011_p3), 1, %s1892_s10  }
  0x58   : > { %s1335_s29 = sshll.u32 (!%p2011_p3), %s378_s25, 3  ;;  %s379_s18 = scalar_lea.sflag (!%p2011_p3), [#allocation3], %s378_s25 }
  0x59   : > { %s382_s22 = scalar_lea.vmem (!%p2011_p3), [#allocation2], %s1335_s29 }
  0x5c   : > { %1871 = dma.done.wait (%p2084_p9), %s379_s18, 128  }
  0x5d   : > { %1873 = vsyncadd (%p2084_p9), %s379_s18, 4294967168 }
  0x5e   : > { %1875 = dma.done.wait (%p2006_p1), [#allocation6], 12288  }
  0x5f   : > { %1877 = vsyncadd (%p2006_p1), [#allocation6], 4294955008 }
  0x60   : > { %1879 = dma.done.wait (%p2006_p1), [#allocation9], 4096  }
  0x61   : > { %1881 = vsyncadd (%p2006_p1), [#allocation9], 4294963200  ;;  %p443_p3 = scmp.lt.s32.totalorder %s1900_s12, 7  ;;  %p1341_p8 = scmp.ne.s32.totalorder %s1900_s12, 0 }
  0x63   : > { %s444_s3 = scalar_select %p443_p3, %s1900_s12, 7 }
  0x64   : > { %453 = sbr.rel (%p1341_p8) target bundleno = 107 (0x6b), region = 76 }
  0x65   : > { %s1340_s4 = sshll.u32 %s444_s3, 3 }
  0x66   : > { %s2129_s26 = scalar_lea.vmem %s2283_s8, %s1340_s4 }
  0x69   : > { %v454_v0 = vld [vmem:[%s2276_s1] sm:$0xff] }
  0x6a   : > { %455 = vst [vmem:[#allocation11] sm:$0xff] %v454_v0 }
  0x6b PF: > { %v465_v1 = vld [vmem:[%s2277_s2 + $0x8] sm:$0xff]  ;;  %v464_v2 = vld [vmem:[%s2277_s2] sm:$0xff]  ;;  %v1919_v3 = vmov 0.0   ;;  %vm1920_vm0 = vmmov 0   ;;  %v590_v5 = vld [vmem:[#allocation5 + $0x168] sm:$0xff]  ;;  %vm470_vm1 = vcmask 130048  }
  0x6c   : > { %1424 = vmatprep.subr.mxu0 %v1919_v3  ;;  %1428 = vmatprep.mubr.msk.f32.mxu0 %vm1920_vm0, %v1919_v3  ;;  %v591_v4 = vld [vmem:[#allocation5 + $0x170] sm:$0xff]  ;;  %v588_v6 = vld [vmem:[#allocation5 + $0x158] sm:$0xff]  ;;  %v585_v10 = vld [vmem:[#allocation5 + $0x140] sm:$0xff]  ;;  %s2298_s4 = sadd.s32 4294967295, %s1908_s14   ;;  %s1921_s17 = smov [#allocation11]  }
  0x6d   : > { %1425 = vmatpush3.msra.mxu0 %v465_v1  ;;  %v456_v7 = vld [vmem:[%s382_s22] sm:$0xff]  ;;  %609 = vmatprep.subr.mxu1 %v591_v4  ;;  %v589_v11 = vld [vmem:[#allocation5 + $0x160] sm:$0xff]  ;;  %v582_v13 = vld [vmem:[#allocation5 + $0x128] sm:$0xff]  ;;  %p2238_p1 = scmp.eq.s32.totalorder %s2298_s4, 7  ;;  %s1177_s19 = sshll.u32 %s1921_s17, 4  ;;  %s1178_s19 = int_to_ptr.vmem [resolvable:$true] %s1177_s19 }
  0x6e   : > { %1426 = vmatprep.subr.mxu0 %v1919_v3  ;;  %610 = vmatpush1.msra.mxu1 %v590_v5  ;;  %v592_v8 = vld [vmem:[#allocation5 + $0x178] sm:$0xff]  ;;  %v587_v9 = vld [vmem:[#allocation5 + $0x150] sm:$0xff]  ;;  %v586_v14 = vld [vmem:[#allocation5 + $0x148] sm:$0xff]  ;;  %s1822_s21 = scalar_lea.vmem %s1178_s19, 128  ;;  %p1829_p12 = scmp.lt.s32.totalorder %s1178_s19, %s1178_s19 }
  0x6f   : > { %1427 = vmatpush3.msra.mxu0 %v464_v2  ;;  %611 = vmatprep.subr.mxu1 %v588_v6  ;;  %v584_v12 = vld [vmem:[#allocation5 + $0x138] sm:$0xff]  ;;  %v581_v15 = vld [vmem:[#allocation5 + $0x120] sm:$0xff]  ;;  %v579_v16 = vld [vmem:[#allocation5 + $0x110] sm:$0xff]  ;;  %p1823_p9 = scmp.ne.s32.totalorder %s1178_s19, %s1822_s21  ;;  %p1830_p13 = scmp.lt.s32.totalorder %s1822_s21, %s1822_s21 }
  0x70   : > { %1429 = vmatmul.mubr.msk.f32.vlgmr.msra.gmra.mxu0 %vm470_vm1, %v456_v7  ;;  %1431 = vmatprep.subr.mxu0 %v1919_v3  ;;  %v583_v17 = vld [vmem:[#allocation5 + $0x130] sm:$0xff]  ;;  %v578_v18 = vld [vmem:[#allocation5 + $0x108] sm:$0xff]  ;;  %v576_v19 = vld [vmem:[#allocation5 + $0xf8] sm:$0xff] }
  0x71   : > { %1432 = vmatpush3.msra.mxu0 %v592_v8  ;;  %612 = vmatpush1.msra.mxu1 %v587_v9  ;;  %v580_v20 = vld [vmem:[#allocation5 + $0x118] sm:$0xff]  ;;  %v575_v21 = vld [vmem:[#allocation5 + $0xf0] sm:$0xff]  ;;  %v573_v22 = vld [vmem:[#allocation5 + $0xe0] sm:$0xff]  ;;  %p1824_p5 = pnand %p1823_p9, %p2238_p1  ;;  %p1831_p0 = por %p1830_p13, %p1829_p12 }
  0x72   : > { %1433 = vmatprep.subr.mxu0 %v1919_v3  ;;  %613 = vmatprep.subr.mxu1 %v585_v10  ;;  %v577_v23 = vld [vmem:[#allocation5 + $0x100] sm:$0xff]  ;;  %v572_v24 = vld [vmem:[#allocation5 + $0xd8] sm:$0xff]  ;;  %v570_v25 = vld [vmem:[#allocation5 + $0xc8] sm:$0xff] }
  0x73   : > { %1434 = vmatpush3.msra.mxu0 %v589_v11  ;;  %614 = vmatpush1.msra.mxu1 %v584_v12  ;;  %v574_v26 = vld [vmem:[#allocation5 + $0xe8] sm:$0xff]  ;;  %v569_v27 = vld [vmem:[#allocation5 + $0xc0] sm:$0xff]  ;;  %v567_v28 = vld [vmem:[#allocation5 + $0xb0] sm:$0xff]  ;;  %p1825_p11 = pneg %p1824_p5 }
  0x74   : > { %1435 = vmatprep.subr.mxu0 %v1919_v3  ;;  %615 = vmatprep.subr.mxu1 %v582_v13  ;;  %v571_v29 = vld [vmem:[#allocation5 + $0xd0] sm:$0xff]  ;;  %v566_v30 = vld [vmem:[#allocation5 + $0xa8] sm:$0xff]  ;;  %v564_v31 = vld [vmem:[#allocation5 + $0x98] sm:$0xff] }
  0x75   : > { %1436 = vmatpush3.msra.mxu0 %v586_v14  ;;  %616 = vmatpush1.msra.mxu1 %v581_v15  ;;  %v568_v32 = vld [vmem:[#allocation5 + $0xb8] sm:$0xff]  ;;  %v563_v33 = vld [vmem:[#allocation5 + $0x90] sm:$0xff]  ;;  %v561_v34 = vld [vmem:[#allocation5 + $0x80] sm:$0xff]  ;;  %p1832_p6 = pnand %p1831_p0, %p1825_p11 }
  0x76   : > { %1437 = vmatprep.subr.mxu0 %v1919_v3  ;;  %617 = vmatprep.subr.mxu1 %v579_v16  ;;  %v565_v35 = vld [vmem:[#allocation5 + $0xa0] sm:$0xff]  ;;  %v560_v36 = vld [vmem:[#allocation5 + $0x78] sm:$0xff]  ;;  %v558_v37 = vld [vmem:[#allocation5 + $0x68] sm:$0xff] }
  0x77   : > { %1438 = vmatpush3.msra.mxu0 %v583_v17  ;;  %618 = vmatpush1.msra.mxu1 %v578_v18  ;;  %v562_v38 = vld [vmem:[#allocation5 + $0x88] sm:$0xff]  ;;  %v557_v39 = vld [vmem:[#allocation5 + $0x60] sm:$0xff]  ;;  %v555_v40 = vld [vmem:[#allocation5 + $0x50] sm:$0xff] }
  0x78   : > { %1439 = vmatprep.subr.mxu0 %v1919_v3  ;;  %619 = vmatprep.subr.mxu1 %v576_v19  ;;  %v559_v41 = vld [vmem:[#allocation5 + $0x70] sm:$0xff]  ;;  %v554_v42 = vld [vmem:[#allocation5 + $0x48] sm:$0xff]  ;;  %v552_v43 = vld [vmem:[#allocation5 + $0x38] sm:$0xff] }
  0x79   : > { %1440 = vmatpush3.msra.mxu0 %v580_v20  ;;  %620 = vmatpush1.msra.mxu1 %v575_v21  ;;  %v556_v44 = vld [vmem:[#allocation5 + $0x58] sm:$0xff]  ;;  %v551_v45 = vld [vmem:[#allocation5 + $0x30] sm:$0xff]  ;;  %v549_v46 = vld [vmem:[#allocation5 + $0x20] sm:$0xff] }
  0x7a   : > { %1441 = vmatprep.subr.mxu0 %v1919_v3  ;;  %621 = vmatprep.subr.mxu1 %v573_v22  ;;  %v553_v47 = vld [vmem:[#allocation5 + $0x40] sm:$0xff]  ;;  %v548_v48 = vld [vmem:[#allocation5 + $0x18] sm:$0xff]  ;;  %v546_v49 = vld [vmem:[#allocation5 + $0x8] sm:$0xff] }
  0x7b   : > { %1442 = vmatpush3.msra.mxu0 %v577_v23  ;;  %622 = vmatpush1.msra.mxu1 %v572_v24  ;;  %v550_v50 = vld [vmem:[#allocation5 + $0x28] sm:$0xff]  ;;  %v545_v51 = vld [vmem:[#allocation5] sm:$0xff]  ;;  %v547_v52 = vld [vmem:[#allocation5 + $0x10] sm:$0xff] }
  0x7c   : > { %1443 = vmatprep.subr.mxu0 %v1919_v3  ;;  %623 = vmatprep.subr.mxu1 %v570_v25  ;;  %v796_v53 = vld [vmem:[#allocation7 + $0x170] sm:$0xff]  ;;  %v795_v59 = vld [vmem:[#allocation7 + $0x168] sm:$0xff]  ;;  %v793_v60 = vld [vmem:[#allocation7 + $0x158] sm:$0xff] }
  0x7d   : > { %1444 = vmatpush3.msra.mxu0 %v574_v26  ;;  %624 = vmatpush1.msra.mxu1 %v569_v27  ;;  %v1343_v54 = vld [vmem:[%s2282_s7 + $0x2] ss:$0 sm:$0xff]  ;;  %v797_v61 = vld [vmem:[#allocation7 + $0x178] sm:$0xff]  ;;  %v790_v63 = vld [vmem:[#allocation7 + $0x140] sm:$0xff] }
  0x7e   : > { %1445 = vmatprep.subr.mxu0 %v1919_v3  ;;  %625 = vmatprep.subr.mxu1 %v567_v28  ;;  %v792_v62 = vld [vmem:[#allocation7 + $0x150] sm:$0xff]  ;;  %v794_v0 = vld [vmem:[#allocation7 + $0x160] sm:$0xff]  ;;  %v789_v1 = vld [vmem:[#allocation7 + $0x138] sm:$0xff] }
  0x7f   : > { %1446 = vmatpush3.msra.mxu0 %v571_v29  ;;  %626 = vmatpush1.msra.mxu1 %v566_v30  ;;  %v787_v2 = vld [vmem:[#allocation7 + $0x128] sm:$0xff]  ;;  %v786_v5 = vld [vmem:[#allocation7 + $0x120] sm:$0xff]  ;;  %v784_v6 = vld [vmem:[#allocation7 + $0x110] sm:$0xff] }
  0x80   : > { %1447 = vmatprep.subr.mxu0 %v1919_v3  ;;  %627 = vmatprep.subr.mxu1 %v564_v31  ;;  %v791_v4 = vld [vmem:[#allocation7 + $0x148] sm:$0xff]  ;;  %v788_v7 = vld [vmem:[#allocation7 + $0x130] sm:$0xff]  ;;  %v781_v9 = vld [vmem:[#allocation7 + $0xf8] sm:$0xff] }
  0x81   : > { %1448 = vmatpush3.msra.mxu0 %v568_v32  ;;  %628 = vmatpush1.msra.mxu1 %v563_v33  ;;  %v783_v8 = vld [vmem:[#allocation7 + $0x108] sm:$0xff]  ;;  %v785_v10 = vld [vmem:[#allocation7 + $0x118] sm:$0xff]  ;;  %v780_v11 = vld [vmem:[#allocation7 + $0xf0] sm:$0xff] }
  0x82   : > { %1449 = vmatprep.subr.mxu0 %v1919_v3  ;;  %629 = vmatprep.subr.mxu1 %v561_v34  ;;  %v778_v12 = vld [vmem:[#allocation7 + $0xe0] sm:$0xff]  ;;  %v777_v14 = vld [vmem:[#allocation7 + $0xd8] sm:$0xff]  ;;  %v775_v15 = vld [vmem:[#allocation7 + $0xc8] sm:$0xff] }
  0x83   : > { %1450 = vmatpush3.msra.mxu0 %v565_v35  ;;  %630 = vmatpush1.msra.mxu1 %v560_v36  ;;  %v782_v13 = vld [vmem:[#allocation7 + $0x100] sm:$0xff]  ;;  %v779_v16 = vld [vmem:[#allocation7 + $0xe8] sm:$0xff]  ;;  %v772_v18 = vld [vmem:[#allocation7 + $0xb0] sm:$0xff] }
  0x84   : > { %1451 = vmatprep.subr.mxu0 %v1919_v3  ;;  %631 = vmatprep.subr.mxu1 %v558_v37  ;;  %v774_v17 = vld [vmem:[#allocation7 + $0xc0] sm:$0xff]  ;;  %v776_v19 = vld [vmem:[#allocation7 + $0xd0] sm:$0xff]  ;;  %v771_v20 = vld [vmem:[#allocation7 + $0xa8] sm:$0xff] }
  0x85   : > { %1452 = vmatpush3.msra.mxu0 %v562_v38  ;;  %632 = vmatpush1.msra.mxu1 %v557_v39  ;;  %v769_v21 = vld [vmem:[#allocation7 + $0x98] sm:$0xff]  ;;  %v768_v23 = vld [vmem:[#allocation7 + $0x90] sm:$0xff]  ;;  %v766_v24 = vld [vmem:[#allocation7 + $0x80] sm:$0xff] }
  0x86   : > { %1453 = vmatprep.subr.mxu0 %v1919_v3  ;;  %633 = vmatprep.subr.mxu1 %v555_v40  ;;  %v773_v22 = vld [vmem:[#allocation7 + $0xb8] sm:$0xff]  ;;  %v770_v25 = vld [vmem:[#allocation7 + $0xa0] sm:$0xff]  ;;  %v763_v27 = vld [vmem:[#allocation7 + $0x68] sm:$0xff] }
  0x87   : > { %1454 = vmatpush3.msra.mxu0 %v559_v41  ;;  %634 = vmatpush1.msra.mxu1 %v554_v42  ;;  %v765_v26 = vld [vmem:[#allocation7 + $0x78] sm:$0xff]  ;;  %v767_v28 = vld [vmem:[#allocation7 + $0x88] sm:$0xff]  ;;  %v762_v29 = vld [vmem:[#allocation7 + $0x60] sm:$0xff] }
  0x88   : > { %1455 = vmatprep.subr.mxu0 %v1919_v3  ;;  %635 = vmatprep.subr.mxu1 %v552_v43  ;;  %v760_v30 = vld [vmem:[#allocation7 + $0x50] sm:$0xff]  ;;  %v759_v32 = vld [vmem:[#allocation7 + $0x48] sm:$0xff]  ;;  %v757_v33 = vld [vmem:[#allocation7 + $0x38] sm:$0xff] }
  0x89   : > { %1456 = vmatpush3.msra.mxu0 %v556_v44  ;;  %636 = vmatpush1.msra.mxu1 %v551_v45  ;;  %v764_v31 = vld [vmem:[#allocation7 + $0x70] sm:$0xff]  ;;  %v761_v34 = vld [vmem:[#allocation7 + $0x58] sm:$0xff]  ;;  %v754_v36 = vld [vmem:[#allocation7 + $0x20] sm:$0xff] }
  0x8a   : > { %1457 = vmatprep.subr.mxu0 %v1919_v3  ;;  %673 = vmatprep.mubr.f32.mxu1 %v1919_v3  ;;  %v756_v35 = vld [vmem:[#allocation7 + $0x30] sm:$0xff]  ;;  %v758_v37 = vld [vmem:[#allocation7 + $0x40] sm:$0xff]  ;;  %v753_v38 = vld [vmem:[#allocation7 + $0x18] sm:$0xff] }
  0x8b   : > { %1463 = vmatprep.mubr.msk.f32.mxu0 %vm1920_vm0, %v1919_v3  ;;  %637 = vmatprep.subr.mxu1 %v549_v46  ;;  %v751_v39 = vld [vmem:[#allocation7 + $0x8] sm:$0xff]  ;;  %v750_v41 = vld [vmem:[#allocation7] sm:$0xff]  ;;  %v752_v43 = vld [vmem:[#allocation7 + $0x10] sm:$0xff] }
  0x8c   : > { %1458 = vmatpush3.msra.mxu0 %v553_v47  ;;  %638 = vmatpush1.msra.mxu1 %v548_v48  ;;  %v755_v40 = vld [vmem:[#allocation7 + $0x28] sm:$0xff]  ;;  %v2182_v42 = vld [vmem:[#allocation11] sm:$0xff]  ;;  %v991_v44 = vld [vmem:[#allocation8 + $0x78] sm:$0xff] }
  0x8d   : > { %1459 = vmatprep.subr.mxu0 %v1919_v3  ;;  %639 = vmatprep.subr.mxu1 %v546_v49  ;;  %v990_v45 = vld [vmem:[#allocation8 + $0x70] sm:$0xff]  ;;  %v989_v46 = vld [vmem:[#allocation8 + $0x68] sm:$0xff]  ;;  %v988_v47 = vld [vmem:[#allocation8 + $0x60] sm:$0xff] }
  0x8e   : > { %1460 = vmatpush3.msra.mxu0 %v550_v50  ;;  %640 = vmatpush1.msra.mxu1 %v545_v51  ;;  %v987_v48 = vld [vmem:[#allocation8 + $0x58] sm:$0xff]  ;;  %v986_v49 = vld [vmem:[#allocation8 + $0x50] sm:$0xff]  ;;  %v985_v50 = vld [vmem:[#allocation8 + $0x48] sm:$0xff] }
  0x8f   : > { %1461 = vmatprep.subr.mxu0 %v1919_v3  ;;  %814 = vmatprep.subr.mxu1 %v796_v53  ;;  %v984_v51 = vld [vmem:[#allocation8 + $0x40] sm:$0xff]  ;;  %v982_v53 = vld [vmem:[#allocation8 + $0x30] sm:$0xff] }
  0x90   : > { %1462 = vmatpush3.msra.mxu0 %v547_v52  ;;  %v983_v52 = vld [vmem:[#allocation8 + $0x38] sm:$0xff] }
  0x91   : > { %1466 = vmatprep.subr.mxu0 %v1919_v3 }
 0x130   : > { %v540_v55 = vpop.f32.mrf.mxu0 }
 0x131   : > { %v541_v56 = vadd.f32 %v1343_v54, %v540_v55  ;;  %v981_v54 = vld [vmem:[#allocation8 + $0x28] sm:$0xff]  ;;  %v980_v55 = vld [vmem:[#allocation8 + $0x20] sm:$0xff] }
 0x132   : > { %v1430_v57 = vpop.f32.mrf.mxu0 }
 0x133   : > { %v544_v58 = vmax.f32 %v541_v56, 0.0  ;;  %v979_v56 = vld [vmem:[#allocation8 + $0x18] sm:$0xff]  ;;  %v978_v57 = vld [vmem:[#allocation8 + $0x10] sm:$0xff] }
 0x135   : > { %674 = vmatmul.mubr.f32.vlgmr.msra.gmra.mxu1 %v544_v58  ;;  %1464 = vmatmul.mubr.f32.vlgmr.msra.gmra.mxu0 %v544_v58  ;;  %v977_v58 = vld [vmem:[#allocation8 + $0x8] sm:$0xff] }
 0x136   : > { %815 = vmatpush1.msra.mxu1 %v795_v59  ;;  %878 = vmatprep.mubr.f32.mxu1 %v1919_v3  ;;  %v976_v59 = vld [vmem:[#allocation8] sm:$0xff] }
 0x137   : > { %816 = vmatprep.subr.mxu1 %v793_v60  ;;  %1467 = vmatpush3.msra.mxu0 %v797_v61  ;;  %v1081_v60 = vld [vmem:[#allocation10 + $0x78] sm:$0xff]  ;;  %v1080_v61 = vld [vmem:[#allocation10 + $0x70] sm:$0xff] }
 0x138   : > { %817 = vmatpush1.msra.mxu1 %v792_v62  ;;  %1468 = vmatprep.subr.mxu0 %v1919_v3  ;;  %v1079_v62 = vld [vmem:[#allocation10 + $0x68] sm:$0xff] }
 0x139   : > { %818 = vmatprep.subr.mxu1 %v790_v63  ;;  %1469 = vmatpush3.msra.mxu0 %v794_v0  ;;  %v1078_v63 = vld [vmem:[#allocation10 + $0x60] sm:$0xff]  ;;  %v1077_v0 = vld [vmem:[#allocation10 + $0x58] sm:$0xff] }
 0x13a   : > { %819 = vmatpush1.msra.mxu1 %v789_v1  ;;  %1470 = vmatprep.subr.mxu0 %v1919_v3  ;;  %v1076_v1 = vld [vmem:[#allocation10 + $0x50] sm:$0xff] }
 0x13b   : > { %820 = vmatprep.subr.mxu1 %v787_v2  ;;  %1471 = vmatpush3.msra.mxu0 %v791_v4  ;;  %v1075_v2 = vld [vmem:[#allocation10 + $0x48] sm:$0xff]  ;;  %v1074_v4 = vld [vmem:[#allocation10 + $0x40] sm:$0xff] }
 0x13c   : > { %821 = vmatpush1.msra.mxu1 %v786_v5  ;;  %1472 = vmatprep.subr.mxu0 %v1919_v3  ;;  %v1073_v5 = vld [vmem:[#allocation10 + $0x38] sm:$0xff] }
 0x13d   : > { %822 = vmatprep.subr.mxu1 %v784_v6  ;;  %1473 = vmatpush3.msra.mxu0 %v788_v7  ;;  %v1072_v6 = vld [vmem:[#allocation10 + $0x30] sm:$0xff]  ;;  %v1071_v7 = vld [vmem:[#allocation10 + $0x28] sm:$0xff] }
 0x13e   : > { %823 = vmatpush1.msra.mxu1 %v783_v8  ;;  %1474 = vmatprep.subr.mxu0 %v1919_v3  ;;  %v1070_v8 = vld [vmem:[#allocation10 + $0x20] sm:$0xff] }
 0x13f   : > { %824 = vmatprep.subr.mxu1 %v781_v9  ;;  %1475 = vmatpush3.msra.mxu0 %v785_v10  ;;  %v1069_v9 = vld [vmem:[#allocation10 + $0x18] sm:$0xff]  ;;  %v1068_v10 = vld [vmem:[#allocation10 + $0x10] sm:$0xff] }
 0x140   : > { %825 = vmatpush1.msra.mxu1 %v780_v11  ;;  %1476 = vmatprep.subr.mxu0 %v1919_v3 }
 0x141   : > { %826 = vmatprep.subr.mxu1 %v778_v12  ;;  %1477 = vmatpush3.msra.mxu0 %v782_v13  ;;  %v594_v13 = vlaneseq }
 0x142   : > { %827 = vmatpush1.msra.mxu1 %v777_v14  ;;  %1478 = vmatprep.subr.mxu0 %v1919_v3 }
 0x143   : > { %828 = vmatprep.subr.mxu1 %v775_v15  ;;  %1479 = vmatpush3.msra.mxu0 %v779_v16  ;;  %v595_v14 = vshrl.u32 %v594_v13, 7  ;;  %v458_v16 = vld [vmem:[%s2282_s7] ss:$4 sm:$0x7] }
 0x144   : > { %829 = vmatpush1.msra.mxu1 %v774_v17  ;;  %1480 = vmatprep.subr.mxu0 %v1919_v3 }
 0x145   : > { %830 = vmatprep.subr.mxu1 %v772_v18  ;;  %1481 = vmatpush3.msra.mxu0 %v776_v19  ;;  %v596_v15 = vsub.s32 0, %v595_v14  ;;  %v1342_v18 = vld [vmem:[%s2282_s7 + $0x1] ss:$4 sm:$0x7] }
 0x146   : > { %831 = vmatpush1.msra.mxu1 %v771_v20  ;;  %1482 = vmatprep.subr.mxu0 %v1919_v3 }
 0x147   : > { %832 = vmatprep.subr.mxu1 %v769_v21  ;;  %1483 = vmatpush3.msra.mxu0 %v773_v22  ;;  %v597_v19 = vrot.slane %v458_v16, %v596_v15  ;;  %v802_v20 = vrot.slane %v1342_v18, %v596_v15  ;;  %v600_v22 = vsub.s32 1, %v595_v14 }
 0x148   : > { %833 = vmatpush1.msra.mxu1 %v768_v23  ;;  %1484 = vmatprep.subr.mxu0 %v1919_v3 }
 0x149   : > { %834 = vmatprep.subr.mxu1 %v766_v24  ;;  %1485 = vmatpush3.msra.mxu0 %v770_v25 }
 0x14a   : > { %835 = vmatpush1.msra.mxu1 %v765_v26  ;;  %1486 = vmatprep.subr.mxu0 %v1919_v3  ;;  %v806_v26 = vrot.slane %v1342_v18, %v600_v22 }
 0x14b   : > { %836 = vmatprep.subr.mxu1 %v763_v27  ;;  %1487 = vmatpush3.msra.mxu0 %v767_v28 }
 0x14c   : > { %837 = vmatpush1.msra.mxu1 %v762_v29  ;;  %1488 = vmatprep.subr.mxu0 %v1919_v3  ;;  %v601_v29 = vrot.slane %v458_v16, %v600_v22 }
 0x14d   : > { %838 = vmatprep.subr.mxu1 %v760_v30  ;;  %1489 = vmatpush3.msra.mxu0 %v764_v31 }
 0x14e   : > { %839 = vmatpush1.msra.mxu1 %v759_v32  ;;  %1490 = vmatprep.subr.mxu0 %v1919_v3 }
 0x14f   : > { %840 = vmatprep.subr.mxu1 %v757_v33  ;;  %1491 = vmatpush3.msra.mxu0 %v761_v34 }
 0x150   : > { %841 = vmatpush1.msra.mxu1 %v756_v35  ;;  %1492 = vmatprep.subr.mxu0 %v1919_v3 }
 0x151   : > { %842 = vmatprep.subr.mxu1 %v754_v36  ;;  %1493 = vmatpush3.msra.mxu0 %v758_v37 }
 0x152   : > { %843 = vmatpush1.msra.mxu1 %v753_v38  ;;  %1494 = vmatprep.subr.mxu0 %v1919_v3 }
 0x153   : > { %844 = vmatprep.subr.mxu1 %v751_v39  ;;  %1495 = vmatpush3.msra.mxu0 %v755_v40  ;;  %v604_v39 = vsub.s32 2, %v595_v14 }
 0x154   : > { %845 = vmatpush1.msra.mxu1 %v750_v41  ;;  %1496 = vmatprep.subr.mxu0 %v1919_v3 }
 0x155   : > { %879 = vmatmul.mubr.f32.vlgmr.msra.gmra.mxu1 %v2182_v42  ;;  %1497 = vmatpush3.msra.mxu0 %v752_v43  ;;  %v810_v40 = vrot.slane %v1342_v18, %v604_v39  ;;  %v605_v43 = vrot.slane %v458_v16, %v604_v39 }
 0x156   : > { %1498 = vmatprep.mubr.msk.f32.mxu0 %vm1920_vm0, %v1919_v3  ;;  %1501 = vmatprep.subr.mxu1 %v1919_v3 }
 0x157   : > { %1499 = vmatmul.mubr.f32.vlgmr.msra.gmra.mxu0 %v2182_v42  ;;  %1533 = vmatprep.mubr.msk.f32.mxu1 %vm1920_vm0, %v1919_v3 }
 0x158   : > { %1536 = vmatprep.subr.mxu0 %v1919_v3  ;;  %1568 = vmatprep.mubr.msk.f32.mxu0 %vm1920_vm0, %v1919_v3 }
 0x159   : > { %1502 = vmatpush3.msra.mxu1 %v991_v44  ;;  %1537 = vmatpush3.msra.mxu0 %v1081_v60 }
 0x15a   : > { %1503 = vmatprep.subr.mxu1 %v1919_v3  ;;  %1538 = vmatprep.subr.mxu0 %v1919_v3 }
 0x15b   : > { %1504 = vmatpush3.msra.mxu1 %v990_v45  ;;  %1539 = vmatpush3.msra.mxu0 %v1080_v61 }
 0x15c   : > { %1505 = vmatprep.subr.mxu1 %v1919_v3  ;;  %1540 = vmatprep.subr.mxu0 %v1919_v3 }
 0x15d   : > { %1506 = vmatpush3.msra.mxu1 %v989_v46  ;;  %1541 = vmatpush3.msra.mxu0 %v1079_v62 }
 0x15e   : > { %1507 = vmatprep.subr.mxu1 %v1919_v3  ;;  %1542 = vmatprep.subr.mxu0 %v1919_v3 }
 0x15f   : > { %1508 = vmatpush3.msra.mxu1 %v988_v47  ;;  %1543 = vmatpush3.msra.mxu0 %v1078_v63 }
 0x160   : > { %1509 = vmatprep.subr.mxu1 %v1919_v3  ;;  %1544 = vmatprep.subr.mxu0 %v1919_v3 }
 0x161   : > { %1510 = vmatpush3.msra.mxu1 %v987_v48  ;;  %1545 = vmatpush3.msra.mxu0 %v1077_v0 }
 0x162   : > { %1511 = vmatprep.subr.mxu1 %v1919_v3  ;;  %1546 = vmatprep.subr.mxu0 %v1919_v3 }
 0x163   : > { %1512 = vmatpush3.msra.mxu1 %v986_v49  ;;  %1547 = vmatpush3.msra.mxu0 %v1076_v1 }
 0x164   : > { %1513 = vmatprep.subr.mxu1 %v1919_v3  ;;  %1548 = vmatprep.subr.mxu0 %v1919_v3 }
 0x165   : > { %1514 = vmatpush3.msra.mxu1 %v985_v50  ;;  %1549 = vmatpush3.msra.mxu0 %v1075_v2 }
 0x166   : > { %1515 = vmatprep.subr.mxu1 %v1919_v3  ;;  %1550 = vmatprep.subr.mxu0 %v1919_v3 }
 0x167   : > { %1516 = vmatpush3.msra.mxu1 %v984_v51  ;;  %1551 = vmatpush3.msra.mxu0 %v1074_v4 }
 0x168   : > { %1517 = vmatprep.subr.mxu1 %v1919_v3  ;;  %1552 = vmatprep.subr.mxu0 %v1919_v3 }
 0x169   : > { %1518 = vmatpush3.msra.mxu1 %v983_v52  ;;  %1553 = vmatpush3.msra.mxu0 %v1073_v5 }
 0x16a   : > { %1519 = vmatprep.subr.mxu1 %v1919_v3  ;;  %1554 = vmatprep.subr.mxu0 %v1919_v3 }
 0x16b   : > { %1520 = vmatpush3.msra.mxu1 %v982_v53  ;;  %1555 = vmatpush3.msra.mxu0 %v1072_v6 }
 0x16c   : > { %1521 = vmatprep.subr.mxu1 %v1919_v3  ;;  %1556 = vmatprep.subr.mxu0 %v1919_v3 }
 0x16d   : > { %1522 = vmatpush3.msra.mxu1 %v981_v54  ;;  %1557 = vmatpush3.msra.mxu0 %v1071_v7 }
 0x16e   : > { %1523 = vmatprep.subr.mxu1 %v1919_v3  ;;  %1558 = vmatprep.subr.mxu0 %v1919_v3 }
 0x16f   : > { %1524 = vmatpush3.msra.mxu1 %v980_v55  ;;  %1559 = vmatpush3.msra.mxu0 %v1070_v8 }
 0x170   : > { %1525 = vmatprep.subr.mxu1 %v1919_v3  ;;  %1560 = vmatprep.subr.mxu0 %v1919_v3 }
 0x171   : > { %1526 = vmatpush3.msra.mxu1 %v979_v56  ;;  %1561 = vmatpush3.msra.mxu0 %v1069_v9  ;;  %v1067_v56 = vld [vmem:[#allocation10 + $0x8] sm:$0xff] }
 0x172   : > { %1527 = vmatprep.subr.mxu1 %v1919_v3  ;;  %1562 = vmatprep.subr.mxu0 %v1919_v3 }
 0x173   : > { %1528 = vmatpush3.msra.mxu1 %v978_v57  ;;  %1563 = vmatpush3.msra.mxu0 %v1068_v10  ;;  %v1066_v57 = vld [vmem:[#allocation10] sm:$0xff] }
 0x174   : > { %1529 = vmatprep.subr.mxu1 %v1919_v3  ;;  %1564 = vmatprep.subr.mxu0 %v1919_v3 }
 0x175   : > { %1530 = vmatpush3.msra.mxu1 %v977_v58  ;;  %1565 = vmatpush3.msra.mxu0 %v1067_v56  ;;  %v1347_v58 = vld [vmem:[%s2282_s7 + $0x6] ss:$0 sm:$0xff] }
 0x176   : > { %1531 = vmatprep.subr.mxu1 %v1919_v3  ;;  %1566 = vmatprep.subr.mxu0 %v1919_v3 }
 0x177   : > { %1532 = vmatpush3.msra.mxu1 %v976_v59  ;;  %1567 = vmatpush3.msra.mxu0 %v1066_v57 }
 0x1f5   : > { %v746_v11 = vpop.f32.mrf.mxu0  ;;  %v675_v17 = vpop.f32.mrf.mxu1 }
 0x1f6   : > { %v676_v24 = vadd.f32 %v675_v17, %v597_v19  ;;  %v747_v47 = vadd.f32 %v746_v11, %v605_v43 }
 0x1f7   : > { %v1465_v12 = vpop.f32.mrf.mxu0  ;;  %v677_v21 = vpop.f32.mrf.mxu1 }
 0x1f8   : > { %v678_v34 = vadd.f32 %v677_v21, %v601_v29 }
 0x215   : > { %v880_v23 = vpop.f32.mrf.mxu1 }
 0x216   : > { %v881_v25 = vadd.f32 %v880_v23, %v802_v20 }
 0x217   : > { %v882_v27 = vpop.f32.mrf.mxu1  ;;  %v951_v28 = vpop.f32.mrf.mxu0 }
 0x218   : > { %v955_v30 = vadd.f32 %v881_v25, %v676_v24  ;;  %v883_v33 = vadd.f32 %v882_v27, %v806_v26  ;;  %v952_v45 = vadd.f32 %v951_v28, %v810_v40 }
 0x219   : > { %v1500_v31 = vpop.f32.mrf.mxu0 }
 0x21a   : > { %v1345_v32 = vmul.f32 -1.442695, %v955_v30  ;;  %v962_v35 = vadd.f32 %v883_v33, %v678_v34 }
 0x21c   : > { %1680 = vpow2.f32 %v1345_v32  ;;  %v1346_v36 = vmul.f32 -1.442695, %v962_v35 }
 0x21e   : > { %1682 = vpow2.f32 %v1346_v36 }
 0x229   : > { %v1681_v37 = vpop.eup %1680 }
 0x22a   : > { %v959_v38 = vadd.f32 1.0, %v1681_v37 }
 0x22b   : > { %v1683_v41 = vpop.eup %1682 }
 0x22c   : > { %1684 = vrcp.f32 %v959_v38  ;;  %v966_v44 = vadd.f32 1.0, %v1683_v41 }
 0x22e   : > { %1686 = vrcp.f32 %v966_v44 }
 0x239   : > { %v1685_v46 = vpop.eup %1684 }
 0x23a   : > { %v969_v48 = vmul.f32 %v1685_v46, %v952_v45 }
 0x23b   : > { %v1687_v50 = vpop.eup %1686 }
 0x23c   : > { %v970_v49 = vadd.f32 %v969_v48, %v747_v47  ;;  %v972_v51 = vsub.f32 1.0, %v1687_v50  ;;  %v974_v54 = vmul.f32 %v1687_v50, %v2182_v42 }
 0x23e   : > { %1688 = vtanh.f32 %v970_v49 }
 0x24b   : > { %v1689_v52 = vpop.eup %1688 }
 0x24c   : > { %v973_v53 = vmul.f32 %v1689_v52, %v972_v51 }
 0x24e   : > { %v975_v55 = vadd.f32 %v974_v54, %v973_v53 }
 0x250   : > { %1534 = vmatmul.mubr.f32.vlgmr.msra.gmra.mxu1 %v975_v55  ;;  %1157 = vst [vmem:[#allocation11] sm:$0xff] %v975_v55 }
 0x310   : > { %v1062_v59 = vpop.f32.mrf.mxu1 }
 0x311   : > { %v1063_v60 = vadd.f32 %v1347_v58, %v1062_v59 }
 0x312   : > { %v1535_v61 = vpop.f32.mrf.mxu1 }
 0x313   : > { %1569 = vmatmul.mubr.f32.vlgmr.msra.gmra.mxu0 %v1063_v60 }
 0x314   : > { %1835 = shalt.err (!%p1832_p6)
}
 0x315   : > { %1590 = dma.vmem_to_hbm [thread:$0]  (%p2238_p1), %s1178_s19, 128, %s2284_s9, [#allocation4]   ;;  %v1348_v3 = vld [vmem:[%s2282_s7 + $0x3] ss:$0 sm:$0xff] }
 0x3d3   : > { %v1152_v42 = vpop.f32.mrf.mxu0 }
 0x3d4   : > { %v1153_v62 = vadd.f32 %v1348_v3, %v1152_v42 }
 0x3d5   : > { %v1570_v63 = vpop.f32.mrf.mxu0 }
 0x3d6   : > { %1156 = vst [vmem:[%s2129_s26] sm:$0xff] %v1153_v62 }
 0x3d7   : > { %1883 = dma.done.wait (%p2238_p1), [#allocation4], 128  }
 0x3d8   : > { %1885 = vsyncadd (%p2238_p1), [#allocation4], 4294967168 }
 0x3d9 PF: > { %s26_s14 = sadd.s32 1, %s1908_s14   ;;  %s2300_s30 = smov %s1892_s10 }
 0x3da   : > { %p23_p2 = scmp.ge.s32.totalorder %s26_s14, 10   ;;  %s2301_s10 = smov %s1896_s11 }
 0x3db   : > { %s2302_s11 = smov %s2093_s28  ;;  %s2303_s12 = smov %s1904_s13 }
 0x3dc   : > { %s2304_s13 = smov %s2306_s20  ;;  %25 = sbr.rel (!%p23_p2) target bundleno = 11 (0xb), region = 126 }
 0x3e1   :  { %1200 = vsyncpa [#allocation3], 1 }
 0x3e2   :  { %1202 = vsyncpa [#allocation3 + $0x1], 1 }
 0x3e3   :  { %1203 = vsyncpa [#allocation6], 1 }
 0x3e4   :  { %1204 = vsyncpa [#allocation9], 1 }
 0x3e5   :  { %1205 = vsyncpa [#allocation4], 1 }
 0x3e6   :  { %1207 = vsyncpa [#allocation4 + $0x1], 1 }

</bundles_post_ra>
